<compile_context>
chip_gen: v7x
topology: tpu7x:2x2x1
jax: 0.10.0
libtpu: 0.0.40
codegen_flags: <defaults>
</compile_context>

<pallas_src>
import jax
import jax.numpy as jnp
from jax.experimental import pallas as pl
from jax.experimental.pallas import tpu as pltpu


def _round_up(x, m):
    return (x + m - 1) // m * m


def encoder_kernel(x_ref, w1_ref, wh_ref, b_ref, out_ref):
    """x_ref: [TB, D]; w1_ref: [D, H]; wh_ref: [H, 2L] (mu | log_sigma_sq);
    b_ref: [2, P] (row 0 = b1 padded, row 1 = [b_mu | b_sigma] padded);
    out_ref: [TB, 2L] = [mu | sigma_square]."""
    H = w1_ref.shape[1]
    L2 = wh_ref.shape[1]
    L = L2 // 2

    x = x_ref[...]                                          # [TB, D]
    b1 = b_ref[0:1, :H]                                     # [1, H]
    bh = b_ref[1:2, :L2]                                    # [1, 2L]

    # fc1 + tanh (MXU matmul, f32 accumulate; tanh on EUP)
    h = jnp.tanh(
        jnp.dot(x, w1_ref[...], preferred_element_type=jnp.float32) + b1
    )                                                       # [TB, H]

    # fused heads: one matmul produces [mu_logits | log_sigma_square]
    heads = jnp.dot(h, wh_ref[...], preferred_element_type=jnp.float32) + bh

    # first L lanes -> mu (identity), last L lanes -> exp(log_sigma_square)
    col = jax.lax.broadcasted_iota(jnp.int32, heads.shape, dimension=1)
    out_ref[...] = jnp.where(col < L, heads, jnp.exp(heads))


def encoder_forward(x, params, *, batch_tile=512):
    """x: [B, data_dim] f32. params: dict from init_params.
    Returns (mu, sigma_square), each [B, latent_dim] f32."""
    B, D = x.shape
    w1 = params["w1"]
    H = w1.shape[1]
    L = params["w_mu"].shape[1]
    L2 = 2 * L

    # ---- pack weights / biases once at the wrapper boundary ----
    w_heads = jnp.concatenate([params["w_mu"], params["w_sigma"]], axis=1)  # [H, 2L]
    P = max(H, L2)
    b_pack = jnp.zeros((2, P), jnp.float32)
    b_pack = b_pack.at[0, :H].set(params["b1"][0])
    b_pack = b_pack.at[1, :L2].set(
        jnp.concatenate([params["b_mu"][0], params["b_sigma"][0]])
    )

    # ---- batch tiling: TB is a multiple of 8, capped for VMEM headroom ----
    TB = min(batch_tile, _round_up(B, 8))
    B_pad = _round_up(B, TB)
    if B_pad != B:
        x = jnp.pad(x, ((0, B_pad - B), (0, 0)))

    out = pl.pallas_call(
        encoder_kernel,
        out_shape=jax.ShapeDtypeStruct((B_pad, L2), jnp.float32),
        grid_spec=pltpu.PrefetchScalarGridSpec(
            num_scalar_prefetch=0,
            grid=(B_pad // TB,),
            in_specs=[
                pl.BlockSpec((TB, D), lambda i: (i, 0)),   # x: tiled over batch
                pl.BlockSpec((D, H), lambda i: (0, 0)),    # w1: VMEM resident
                pl.BlockSpec((H, L2), lambda i: (0, 0)),   # fused head weights
                pl.BlockSpec((2, P), lambda i: (0, 0)),    # packed biases
            ],
            out_specs=pl.BlockSpec((TB, L2), lambda i: (i, 0)),
        ),
        compiler_params=pltpu.CompilerParams(
            dimension_semantics=("parallel",),
        ),
    )(x, w1, w_heads, b_pack)

    out = out[:B]
    return out[:, :L], out[:, L:]


def init_params(key, data_dimension, hidden_units, latent_dimension):
    """Deterministic init mimicking nn.Linear (uniform +/- 1/sqrt(fan_in))."""
    ks = jax.random.split(key, 6)

    def linear(kw, kb, fan_in, fan_out):
        bound = 1.0 / jnp.sqrt(jnp.float32(fan_in))
        w = jax.random.uniform(kw, (fan_in, fan_out), jnp.float32, -bound, bound)
        b = jax.random.uniform(kb, (1, fan_out), jnp.float32, -bound, bound)
        return w, b

    w1, b1 = linear(ks[0], ks[1], data_dimension, hidden_units)
    w_mu, b_mu = linear(ks[2], ks[3], hidden_units, latent_dimension)
    w_sg, b_sg = linear(ks[4], ks[5], hidden_units, latent_dimension)
    return {"w1": w1, "b1": b1,
            "w_mu": w_mu, "b_mu": b_mu,
            "w_sigma": w_sg, "b_sigma": b_sg}


def encoder_ref(x, p):
    """Pure-JAX reference of the PyTorch forward."""
    h = jnp.tanh(x @ p["w1"] + p["b1"])
    mu = h @ p["w_mu"] + p["b_mu"]
    sigma_square = jnp.exp(h @ p["w_sigma"] + p["b_sigma"])
    return mu, sigma_square


if __name__ == "__main__":
    # Small shapes consistent with the module: Linear-based encoder on flat inputs.
    batch = 8
    data_dimension = 64
    hidden_units = 32
    latent_dimension = 16

    key = jax.random.PRNGKey(0)
    k_x, k_p = jax.random.split(key)
    x = jax.random.normal(k_x, (batch, data_dimension), jnp.float32)
    params = init_params(k_p, data_dimension, hidden_units, latent_dimension)

    mu, sigma_square = encoder_forward(x, params)
    mu = jax.block_until_ready(mu)
    sigma_square = jax.block_until_ready(sigma_square)

    mu_ref, sig_ref = encoder_ref(x, params)
    assert mu.shape == (batch, latent_dimension)
    assert sigma_square.shape == (batch, latent_dimension)
    assert jnp.allclose(mu, mu_ref, atol=1e-5, rtol=1e-5)
    assert jnp.allclose(sigma_square, sig_ref, atol=1e-5, rtol=1e-5)
    assert bool(jnp.all(sigma_square > 0))

    print("KERNEL_OK")
</pallas_src>

<mosaic_0001>
module attributes {stable_mosaic.version = 11 : i64} {
  func.func @encoder_kernel(%arg0: i32, %arg1: memref<8x64xf32, #tpu.memory_space<vmem>>, %arg2: memref<64x32xf32, #tpu.memory_space<vmem>>, %arg3: memref<32x32xf32, #tpu.memory_space<vmem>>, %arg4: memref<2x32xf32, #tpu.memory_space<vmem>>, %arg5: memref<8x32xf32, #tpu.memory_space<vmem>>) attributes {dimension_semantics = [#tpu.dimension_semantics<parallel>], iteration_bounds = array<i64: 1>, scalar_prefetch = 0 : i64, scratch_operands = 0 : i64, tpu.core_type = #tpu.core_type<tc>, window_params = [{transform_indices = @transform_0, window_bounds = array<i64: 8, 64>}, {pipeline_mode = #tpu.pipeline_mode<synchronous>, transform_indices = @transform_1, window_bounds = array<i64: 64, 32>}, {pipeline_mode = #tpu.pipeline_mode<synchronous>, transform_indices = @transform_2, window_bounds = array<i64: 32, 32>}, {pipeline_mode = #tpu.pipeline_mode<synchronous>, transform_indices = @transform_3, window_bounds = array<i64: 2, 32>}, {transform_indices = @transform_4, window_bounds = array<i64: 8, 32>}]} {
    %c0 = arith.constant 0 : index
    %c0_0 = arith.constant 0 : index
    %0 = vector.load %arg1[%c0, %c0_0] : memref<8x64xf32, #tpu.memory_space<vmem>>, vector<8x64xf32>
    %c0_1 = arith.constant 0 : index
    %c0_2 = arith.constant 0 : index
    %1 = vector.load %arg4[%c0_1, %c0_2] : memref<2x32xf32, #tpu.memory_space<vmem>>, vector<1x32xf32>
    %c1 = arith.constant 1 : index
    %c0_3 = arith.constant 0 : index
    %2 = vector.load %arg4[%c1, %c0_3] : memref<2x32xf32, #tpu.memory_space<vmem>>, vector<1x32xf32>
    %c0_4 = arith.constant 0 : index
    %c0_5 = arith.constant 0 : index
    %3 = vector.load %arg2[%c0_4, %c0_5] : memref<64x32xf32, #tpu.memory_space<vmem>>, vector<64x32xf32>
    %cst = arith.constant dense<0.000000e+00> : vector<8x32xf32>
    %4 = tpu.matmul %0, %3, %cst {dimension_numbers = #tpu.dot_dimension_numbers<[1], [0], [0], [1], [0, 0, 1, 1], [], []>} : vector<8x64xf32>, vector<64x32xf32>, vector<8x32xf32> -> vector<8x32xf32>
    %5 = vector.broadcast %1 : vector<1x32xf32> to vector<8x32xf32>
    %6 = arith.addf %4, %5 : vector<8x32xf32>
    %7 = math.tanh %6 : vector<8x32xf32>
    %c0_6 = arith.constant 0 : index
    %c0_7 = arith.constant 0 : index
    %8 = vector.load %arg3[%c0_6, %c0_7] : memref<32x32xf32, #tpu.memory_space<vmem>>, vector<32x32xf32>
    %cst_8 = arith.constant dense<0.000000e+00> : vector<8x32xf32>
    %9 = tpu.matmul %7, %8, %cst_8 {dimension_numbers = #tpu.dot_dimension_numbers<[1], [0], [0], [1], [0, 0, 1, 1], [], []>} : vector<8x32xf32>, vector<32x32xf32>, vector<8x32xf32> -> vector<8x32xf32>
    %10 = vector.broadcast %2 : vector<1x32xf32> to vector<8x32xf32>
    %11 = arith.addf %9, %10 : vector<8x32xf32>
    %12 = tpu.iota {dimensions = array<i32: 1>} : vector<8x32xi32>
    %c16_i32 = arith.constant 16 : i32
    %13 = vector.broadcast %c16_i32 : i32 to vector<8x32xi32>
    %14 = arith.cmpi slt, %12, %13 : vector<8x32xi32>
    %15 = math.exp %11 : vector<8x32xf32>
    %16 = arith.select %14, %11, %15 : vector<8x32xi1>, vector<8x32xf32>
    %c0_9 = arith.constant 0 : index
    %c0_10 = arith.constant 0 : index
    %17 = vector.load %arg5[%c0_9, %c0_10] : memref<8x32xf32, #tpu.memory_space<vmem>>, vector<8x32xf32>
    tpu.vector_store %arg5[%c0_9, %c0_10], %16 {strides = array<i32>} : memref<8x32xf32, #tpu.memory_space<vmem>>, vector<8x32xf32>,
    return
  }
  func.func @transform_0(%arg0: i32) -> (i32, i32) {
    %c0_i32 = arith.constant 0 : i32
    %c0_i32_0 = arith.constant 0 : i32
    return %arg0, %c0_i32 : i32, i32
  }
  func.func @transform_1(%arg0: i32) -> (i32, i32) {
    %c0_i32 = arith.constant 0 : i32
    %c0_i32_0 = arith.constant 0 : i32
    %c0_i32_1 = arith.constant 0 : i32
    return %c0_i32, %c0_i32_0 : i32, i32
  }
  func.func @transform_2(%arg0: i32) -> (i32, i32) {
    %c0_i32 = arith.constant 0 : i32
    %c0_i32_0 = arith.constant 0 : i32
    %c0_i32_1 = arith.constant 0 : i32
    return %c0_i32, %c0_i32_0 : i32, i32
  }
  func.func @transform_3(%arg0: i32) -> (i32, i32) {
    %c0_i32 = arith.constant 0 : i32
    %c0_i32_0 = arith.constant 0 : i32
    %c0_i32_1 = arith.constant 0 : i32
    return %c0_i32, %c0_i32_0 : i32, i32
  }
  func.func @transform_4(%arg0: i32) -> (i32, i32) {
    %c0_i32 = arith.constant 0 : i32
    %c0_i32_0 = arith.constant 0 : i32
    return %arg0, %c0_i32 : i32, i32
  }
}

</mosaic_0001>

<bundles_post_ra>
// kernel: tpu_custom_call.1
= control target key start
LH: loop header
LB: loop body
LE: loop exit
PB: predicated region body
PF: predicated region fallthrough
CT: control target
= control target key end

     0   :  { %v309_v3 = vmov 0.0|0.0   ;;  %vm310_vm0 = vmmov 0   ;;  %v311_v6 = vmov 0.0   ;;  %s397_s0 = inlined_call_operand.vmem [shape: f32[8,64], index: 0, kind: input, shape index: {}]   ;;  %s398_s1 = inlined_call_operand.vmem [shape: f32[64,32], index: 1, kind: input, shape index: {}]   ;;  %s399_s2 = inlined_call_operand.vmem [shape: f32[32,32], index: 2, kind: input, shape index: {}]   ;;  %s400_s3 = inlined_call_operand.vmem [shape: f32[2,32], index: 3, kind: input, shape index: {}]   ;;  %s401_s4 = inlined_call_operand.hbm [shape: f32[8,32], index: 4, kind: output, shape index: {}]  }
   0x1   :  { %v21_v0 = vld [vmem:[%s398_s1] sm:$0xff]  ;;  %v22_v1 = vld [vmem:[%s398_s1 + $0x8] sm:$0xff]  ;;  %v23_v2 = vld [vmem:[%s398_s1 + $0x10] sm:$0xff]  ;;  %259 = vmatprep.subr.bf16.mxu0 %v309_v3  ;;  %245 = vmatprep.mubr.msk.f32.mxu0 %vm310_vm0, %v311_v6 }
   0x2   :  { %v260_v4 = vpack.c.bf16 %v22_v1, %v21_v0  ;;  %v24_v5 = vld [vmem:[%s398_s1 + $0x18] sm:$0xff]  ;;  %271 = vmatprep.subr.bf16.mxu1 %v309_v3  ;;  %256 = vmatprep.mubr.msk.f32.mxu1 %vm310_vm0, %v311_v6 }
   0x3   :  { %v263_v7 = vpack.c.bf16 %v24_v5, %v23_v2 }
   0x4   :  { %261 = vmatpush3.bf16.msra.mxu0 %v260_v4 }
   0x5   :  { %9 = vsyncpa [#allocation3], 0  ;;  %262 = vmatprep.subr.bf16.mxu0 %v309_v3  ;;  %v25_v8 = vld [vmem:[%s398_s1 + $0x20] sm:$0xff]  ;;  %v26_v9 = vld [vmem:[%s398_s1 + $0x28] sm:$0xff]  ;;  %vm33_vm1 = vcmask 523264   ;;  %vm116_vm2 = vcmask 261120   ;;  %v190_v31 = vlaneseq }
   0x6   :  { %v266_v10 = vpack.c.bf16 %v26_v9, %v25_v8  ;;  %v27_v11 = vld [vmem:[%s398_s1 + $0x30] sm:$0xff]  ;;  %v28_v12 = vld [vmem:[%s398_s1 + $0x38] sm:$0xff]  ;;  %v18_v14 = vld [vmem:[%s397_s0] sm:$0xff] }
   0x7   :  { %v269_v13 = vpack.c.bf16 %v28_v12, %v27_v11  ;;  %v108_v15 = vld [vmem:[%s399_s2] sm:$0xff]  ;;  %v109_v16 = vld [vmem:[%s399_s2 + $0x8] sm:$0xff]  ;;  %v110_v17 = vld [vmem:[%s399_s2 + $0x10] sm:$0xff]  ;;  %v191_v32 = vand.u32 127, %v190_v31 }
   0x8   :  { %264 = vmatpush3.bf16.msra.mxu0 %v263_v7  ;;  %v272_v18 = vpack.c.bf16 %v109_v16, %v108_v15  ;;  %v111_v19 = vld [vmem:[%s399_s2 + $0x18] sm:$0xff]  ;;  %v211_v21 = vld [vmem:[%s400_s3] ss:$0 sm:$0xff]  ;;  %v213_v26 = vld [vmem:[%s400_s3 + $0x1] ss:$0 sm:$0xff]  ;;  %s312_s2 = smov [#allocation2]  }
   0x9   :  { %265 = vmatprep.subr.bf16.mxu0 %v309_v3  ;;  %v275_v20 = vpack.c.bf16 %v111_v19, %v110_v17  ;;  %s203_s17 = sshll.u32 %s312_s2, 4  ;;  %vm192_vm3 = vcmp.lt.s32.totalorder %v191_v32, 16  ;;  %s204_s17 = int_to_ptr.vmem [resolvable:$true] %s203_s17 }
   0xa   :  { %273 = vmatpush3.bf16.msra.mxu1 %v272_v18  ;;  %s285_s18 = scalar_lea.vmem %s204_s17, 128  ;;  %p290_p1 = scmp.lt.s32.totalorder %s204_s17, %s204_s17 }
   0xb   :  { %274 = vmatprep.subr.bf16.mxu1 %v309_v3  ;;  %p286_p0 = scmp.ne.s32.totalorder %s204_s17, %s285_s18  ;;  %p291_p2 = scmp.lt.s32.totalorder %s285_s18, %s285_s18 }
   0xc   :  { %267 = vmatpush3.bf16.msra.mxu0 %v266_v10 }
   0xd   :  { %268 = vmatprep.subr.bf16.mxu0 %v309_v3  ;;  %p292_p3 = por %p291_p2, %p290_p1 }
   0xe   :  { %276 = vmatpush3.bf16.msra.mxu1 %v275_v20 }
   0xf   :  { %p293_p4 = pnand %p292_p3, %p286_p0 }
  0x10   :  { %270 = vmatpush3.bf16.msra.mxu0 %v269_v13 }
  0x13   :  { %246 = vmatmul.mubr.msk.f32.vlgmr.msra.gmra.mrb[0].mxu0 %vm33_vm1, %v18_v14 }
  0xe6   :  { %v103_v22 = vpop.f32.mrb[0].mxu0 }
  0xe7   :  { %v104_v23 = vadd.f32 %v211_v21, %v103_v22  ;;  %v247_v24 = vpop.f32.mrb[1].mxu0 }
  0xe9   :  { %281 = vtanh.f32 %v104_v23 }
  0xf3   :  { %v282_v25 = vpop.eup %281 }
  0xf4   :  { %257 = vmatmul.mubr.msk.f32.vlgmr.msra.gmra.mrb[0].mxu1 %vm116_vm2, %v282_v25 }
 0x1c7   :  { %v186_v27 = vpop.f32.mrb[0].mxu1 }
 0x1c8   :  { %v187_v28 = vadd.f32 %v213_v26, %v186_v27  ;;  %v258_v29 = vpop.f32.mrb[1].mxu1 }
 0x1ca   :  { %v193_v30 = vmul.f32 1.442695, %v187_v28 }
 0x1cc   :  { %283 = vpow2.f32 %v193_v30 }
 0x1d6   :  { %v284_v33 = vpop.eup %283 }
 0x1d7   :  { %v195_v34 = vsel %vm192_vm3, %v187_v28, %v284_v33 }
 0x1d8   :  { %196 = vst.msk [vmem:[#allocation2] sm:$0xff] %vm116_vm2, %v195_v34 }
 0x1d9   :  { %296 = shalt.err (!%p293_p4)
}
 0x1da   :  { %s297_s20 = scalar_lea.hbm %s401_s4, 128 }
 0x1db   :  { %p298_p5 = scmp.ne.s32.totalorder %s401_s4, %s297_s20  ;;  %p301_p6 = scmp.lt.u32.totalorder %s297_s20, %s401_s4 }
 0x1dd   :  { %p303_p7 = pnand %p301_p6, %p298_p5 }
 0x1df   :  { %306 = shalt.err (!%p303_p7)
}
 0x1e0   :  { %206 = dma.vmem_to_hbm [thread:$0]  %s204_s17, 128, %s401_s4, [#allocation3]  }
 0x1e1   :  { %307 = dma.done.wait [#allocation3], 128  }
 0x1e2   :  { %308 = vsyncadd [#allocation3], 4294967168 }
 0x1e3   :  { %210 = vsyncpa [#allocation3], 1 }

</bundles_post_ra>
